<compile_context>
chip_gen: v7x
topology: tpu7x:2x2x1
jax: 0.10.0
libtpu: 0.0.40
codegen_flags: <defaults>
</compile_context>

<pallas_src>
import functools

import jax
import jax.numpy as jnp
from jax import lax
from jax.experimental import pallas as pl
from jax.experimental.pallas import tpu as pltpu


LANE_CHUNK = 512  # inner vreg-resident batch chunk (multiple of 128)


def _round_up(x, m):
    return ((x + m - 1) // m) * m


def _mlp_kernel(x_ref,
                w1_ref, b1_ref,
                w2_ref, b2_ref,
                w3_ref, b3_ref,
                w4_ref, b4_ref,
                o_ref, *, chunk):
    """Feature-major MLP: x_ref [4, TILE_B] -> o_ref [2, TILE_B].

    Compute walks the batch tile in `chunk`-wide lane slices so the per-layer
    intermediates stay in vregs even when the DMA tile (TILE_B) is large.
    """
    num_chunks = x_ref.shape[1] // chunk

    def body(j, carry):
        off = pl.multiple_of(j * chunk, chunk)
        h = x_ref[:, pl.ds(off, chunk)]                                    # [4, chunk]
        # fc1 + ReLU : [20, chunk]
        h = jnp.maximum(
            jnp.dot(w1_ref[...], h, preferred_element_type=jnp.float32) + b1_ref[...], 0.0)
        # fc2 + ReLU : [40, chunk]
        h = jnp.maximum(
            jnp.dot(w2_ref[...], h, preferred_element_type=jnp.float32) + b2_ref[...], 0.0)
        # fc3 + ReLU : [20, chunk]
        h = jnp.maximum(
            jnp.dot(w3_ref[...], h, preferred_element_type=jnp.float32) + b3_ref[...], 0.0)
        # fc4 (no activation) : [2, chunk] -- lane-dense store at a 128-aligned offset.
        h = jnp.dot(w4_ref[...], h, preferred_element_type=jnp.float32) + b4_ref[...]
        o_ref[:, pl.ds(off, chunk)] = h.astype(o_ref.dtype)
        return carry

    lax.fori_loop(0, num_chunks, body, 0, unroll=True)


def _plan_tiles(B, tile_b):
    # Keep the lane tile a multiple of 256 (full 256-wide MXU-N pushes on
    # v6e/v7x) and cap it so the batch grid has >= 2 steps whenever B allows,
    # letting the "parallel" axis shard across v7x's two TensorCores.
    cap = _round_up(max(-(-B // 2), 1), 256)
    tile_b = max(256, min(_round_up(tile_b, 256), cap))
    chunk = LANE_CHUNK if tile_b % LANE_CHUNK == 0 else 256
    b_pad = _round_up(B, tile_b)
    return tile_b, b_pad, chunk


def net_forward_feature_major(xt, params, tile_b=2048):
    """Preferred entry point. xt: [4, B] float32 (feature-major). Returns [2, B]."""
    (w1, b1), (w2, b2), (w3, b3), (w4, b4) = params
    in_dim, B = xt.shape
    out_dim = w4.shape[0]

    tile_b, b_pad, chunk = _plan_tiles(B, tile_b)
    if b_pad != B:
        xt = jnp.pad(xt, ((0, 0), (0, b_pad - B)))  # single-pass zero batch pad

    grid = (b_pad // tile_b,)

    def act_spec(feat):
        # Activation tile: full feature extent, batch-tile on the lane axis.
        return pl.BlockSpec((feat, tile_b), lambda i: (0, i))

    def resident_spec(arr):
        # Constant index_map -> weight/bias stays VMEM-resident across steps.
        return pl.BlockSpec(arr.shape, lambda i: (0, 0))

    weight_bytes = sum(int(a.size) * a.dtype.itemsize
                       for pair in params for a in pair)
    cost = pl.CostEstimate(
        flops=2 * b_pad * (4 * 20 + 20 * 40 + 40 * 20 + 20 * 2),
        transcendentals=0,
        bytes_accessed=(in_dim + out_dim) * 4 * b_pad + weight_bytes)

    out = pl.pallas_call(
        functools.partial(_mlp_kernel, chunk=chunk),
        out_shape=jax.ShapeDtypeStruct((out_dim, b_pad), jnp.float32),
        grid=grid,
        in_specs=[
            act_spec(in_dim),
            resident_spec(w1), resident_spec(b1),
            resident_spec(w2), resident_spec(b2),
            resident_spec(w3), resident_spec(b3),
            resident_spec(w4), resident_spec(b4),
        ],
        out_specs=act_spec(out_dim),
        compiler_params=pltpu.CompilerParams(
            dimension_semantics=("parallel",)),
        cost_estimate=cost,
    )(xt, w1, b1, w2, b2, w3, b3, w4, b4)

    return out[:, :B]


def net_forward(x, params, tile_b=2048):
    """PyTorch-layout entry point: x [B, 4] -> [B, 2].

    Pays one fused transpose(+pad) pass per side of the kernel; callers that
    can keep activations feature-major should use net_forward_feature_major.
    """
    return net_forward_feature_major(x.T, params, tile_b=tile_b).T


def init_linear(key, fan_in, fan_out):
    # Mimic PyTorch nn.Linear default init: U(-1/sqrt(fan_in), 1/sqrt(fan_in)).
    kw, kb = jax.random.split(key)
    bound = float(fan_in) ** -0.5
    w = jax.random.uniform(kw, (fan_out, fan_in), jnp.float32, -bound, bound)  # [out, in]
    b = jax.random.uniform(kb, (fan_out, 1), jnp.float32, -bound, bound)       # [out, 1]
    return w, b


if __name__ == "__main__":
    key = jax.random.PRNGKey(0)
    k_x, k1, k2, k3, k4 = jax.random.split(key, 5)

    params = (
        init_linear(k1, 4, 20),
        init_linear(k2, 20, 40),
        init_linear(k3, 40, 20),
        init_linear(k4, 20, 2),
    )

    # Pure-JAX reference (same math as the PyTorch module).
    def ref(x, params):
        h = x
        for i, (w, b) in enumerate(params):
            h = h @ w.T + b[:, 0]
            if i < 3:
                h = jnp.maximum(h, 0.0)
        return h

    # Three configs:
    #   B=8     -> single padded 256-lane tile, grid=(1,)
    #   B=1000  -> tile capped to 512 so grid=(2,) (two TCs on v7x), padded batch
    #   B=4096  -> tile 2048, grid=(2,), 4x512 inner chunks per step (no padding)
    for B, tb in ((8, 2048), (1000, 2048), (4096, 2048)):
        x = jax.random.normal(jax.random.fold_in(k_x, B), (B, 4), jnp.float32)
        out = jax.block_until_ready(net_forward(x, params, tile_b=tb))
        expected = ref(x, params)
        assert out.shape == (B, 2)
        err = float(jnp.max(jnp.abs(out - expected)))
        assert jnp.allclose(out, expected, atol=1e-4, rtol=1e-4), \
            f"mismatch at B={B}: max abs err {err}"

    print("KERNEL_OK")
</pallas_src>

<mosaic_0001>
module attributes {stable_mosaic.version = 11 : i64} {
  func.func @_mlp_kernel(%arg0: i32, %arg1: memref<4x256xf32, #tpu.memory_space<vmem>>, %arg2: memref<20x4xf32, #tpu.memory_space<vmem>>, %arg3: memref<20x1xf32, #tpu.memory_space<vmem>>, %arg4: memref<40x20xf32, #tpu.memory_space<vmem>>, %arg5: memref<40x1xf32, #tpu.memory_space<vmem>>, %arg6: memref<20x40xf32, #tpu.memory_space<vmem>>, %arg7: memref<20x1xf32, #tpu.memory_space<vmem>>, %arg8: memref<2x20xf32, #tpu.memory_space<vmem>>, %arg9: memref<2x1xf32, #tpu.memory_space<vmem>>, %arg10: memref<2x256xf32, #tpu.memory_space<vmem>>) attributes {dimension_semantics = [#tpu.dimension_semantics<parallel>], iteration_bounds = array<i64: 1>, scalar_prefetch = 0 : i64, scratch_operands = 0 : i64, tpu.core_type = #tpu.core_type<tc>, window_params = [{transform_indices = @transform_0, window_bounds = array<i64: 4, 256>}, {pipeline_mode = #tpu.pipeline_mode<synchronous>, transform_indices = @transform_1, window_bounds = array<i64: 20, 4>}, {pipeline_mode = #tpu.pipeline_mode<synchronous>, transform_indices = @transform_2, window_bounds = array<i64: 20, 1>}, {pipeline_mode = #tpu.pipeline_mode<synchronous>, transform_indices = @transform_3, window_bounds = array<i64: 40, 20>}, {pipeline_mode = #tpu.pipeline_mode<synchronous>, transform_indices = @transform_4, window_bounds = array<i64: 40, 1>}, {pipeline_mode = #tpu.pipeline_mode<synchronous>, transform_indices = @transform_5, window_bounds = array<i64: 20, 40>}, {pipeline_mode = #tpu.pipeline_mode<synchronous>, transform_indices = @transform_6, window_bounds = array<i64: 20, 1>}, {pipeline_mode = #tpu.pipeline_mode<synchronous>, transform_indices = @transform_7, window_bounds = array<i64: 2, 20>}, {pipeline_mode = #tpu.pipeline_mode<synchronous>, transform_indices = @transform_8, window_bounds = array<i64: 2, 1>}, {transform_indices = @transform_9, window_bounds = array<i64: 2, 256>}]} {
    %c0_i32 = arith.constant 0 : i32
    %c256_i32 = arith.constant 256 : i32
    %0 = arith.muli %c0_i32, %c256_i32 : i32
    %1 = tpu.assume_multiple %0, 256 : i32
    %c0 = arith.constant 0 : index
    %2 = arith.index_cast %1 : i32 to index
    %3 = vector.load %arg1[%c0, %2] : memref<4x256xf32, #tpu.memory_space<vmem>>, vector<4x256xf32>
    %c0_0 = arith.constant 0 : index
    %c0_1 = arith.constant 0 : index
    %4 = vector.load %arg2[%c0_0, %c0_1] : memref<20x4xf32, #tpu.memory_space<vmem>>, vector<20x4xf32>
    %cst = arith.constant dense<0.000000e+00> : vector<20x256xf32>
    %5 = tpu.matmul %4, %3, %cst {dimension_numbers = #tpu.dot_dimension_numbers<[1], [0], [0], [1], [0, 0, 1, 1], [], []>} : vector<20x4xf32>, vector<4x256xf32>, vector<20x256xf32> -> vector<20x256xf32>
    %c0_2 = arith.constant 0 : index
    %c0_3 = arith.constant 0 : index
    %6 = vector.load %arg3[%c0_2, %c0_3] : memref<20x1xf32, #tpu.memory_space<vmem>>, vector<20x1xf32>
    %7 = vector.broadcast %6 : vector<20x1xf32> to vector<20x256xf32>
    %8 = arith.addf %5, %7 : vector<20x256xf32>
    %cst_4 = arith.constant 0.000000e+00 : f32
    %9 = vector.broadcast %cst_4 : f32 to vector<20x256xf32>
    %10 = arith.maximumf %8, %9 : vector<20x256xf32>
    %c0_5 = arith.constant 0 : index
    %c0_6 = arith.constant 0 : index
    %11 = vector.load %arg4[%c0_5, %c0_6] : memref<40x20xf32, #tpu.memory_space<vmem>>, vector<40x20xf32>
    %cst_7 = arith.constant dense<0.000000e+00> : vector<40x256xf32>
    %12 = tpu.matmul %11, %10, %cst_7 {dimension_numbers = #tpu.dot_dimension_numbers<[1], [0], [0], [1], [0, 0, 1, 1], [], []>} : vector<40x20xf32>, vector<20x256xf32>, vector<40x256xf32> -> vector<40x256xf32>
    %c0_8 = arith.constant 0 : index
    %c0_9 = arith.constant 0 : index
    %13 = vector.load %arg5[%c0_8, %c0_9] : memref<40x1xf32, #tpu.memory_space<vmem>>, vector<40x1xf32>
    %14 = vector.broadcast %13 : vector<40x1xf32> to vector<40x256xf32>
    %15 = arith.addf %12, %14 : vector<40x256xf32>
    %cst_10 = arith.constant 0.000000e+00 : f32
    %16 = vector.broadcast %cst_10 : f32 to vector<40x256xf32>
    %17 = arith.maximumf %15, %16 : vector<40x256xf32>
    %c0_11 = arith.constant 0 : index
    %c0_12 = arith.constant 0 : index
    %18 = vector.load %arg6[%c0_11, %c0_12] : memref<20x40xf32, #tpu.memory_space<vmem>>, vector<20x40xf32>
    %cst_13 = arith.constant dense<0.000000e+00> : vector<20x256xf32>
    %19 = tpu.matmul %18, %17, %cst_13 {dimension_numbers = #tpu.dot_dimension_numbers<[1], [0], [0], [1], [0, 0, 1, 1], [], []>} : vector<20x40xf32>, vector<40x256xf32>, vector<20x256xf32> -> vector<20x256xf32>
    %c0_14 = arith.constant 0 : index
    %c0_15 = arith.constant 0 : index
    %20 = vector.load %arg7[%c0_14, %c0_15] : memref<20x1xf32, #tpu.memory_space<vmem>>, vector<20x1xf32>
    %21 = vector.broadcast %20 : vector<20x1xf32> to vector<20x256xf32>
    %22 = arith.addf %19, %21 : vector<20x256xf32>
    %cst_16 = arith.constant 0.000000e+00 : f32
    %23 = vector.broadcast %cst_16 : f32 to vector<20x256xf32>
    %24 = arith.maximumf %22, %23 : vector<20x256xf32>
    %c0_17 = arith.constant 0 : index
    %c0_18 = arith.constant 0 : index
    %25 = vector.load %arg8[%c0_17, %c0_18] : memref<2x20xf32, #tpu.memory_space<vmem>>, vector<2x20xf32>
    %cst_19 = arith.constant dense<0.000000e+00> : vector<2x256xf32>
    %26 = tpu.matmul %25, %24, %cst_19 {dimension_numbers = #tpu.dot_dimension_numbers<[1], [0], [0], [1], [0, 0, 1, 1], [], []>} : vector<2x20xf32>, vector<20x256xf32>, vector<2x256xf32> -> vector<2x256xf32>
    %c0_20 = arith.constant 0 : index
    %c0_21 = arith.constant 0 : index
    %27 = vector.load %arg9[%c0_20, %c0_21] : memref<2x1xf32, #tpu.memory_space<vmem>>, vector<2x1xf32>
    %28 = vector.broadcast %27 : vector<2x1xf32> to vector<2x256xf32>
    %29 = arith.addf %26, %28 : vector<2x256xf32>
    %c0_22 = arith.constant 0 : index
    %30 = arith.index_cast %1 : i32 to index
    %31 = vector.load %arg10[%c0_22, %30] : memref<2x256xf32, #tpu.memory_space<vmem>>, vector<2x256xf32>
    tpu.vector_store %arg10[%c0_22, %30], %29 {strides = array<i32>} : memref<2x256xf32, #tpu.memory_space<vmem>>, vector<2x256xf32>,
    %c1_i32 = arith.constant 1 : i32
    return
  }
  func.func @transform_0(%arg0: i32) -> (i32, i32) {
    %c0_i32 = arith.constant 0 : i32
    %c0_i32_0 = arith.constant 0 : i32
    return %c0_i32, %arg0 : i32, i32
  }
  func.func @transform_1(%arg0: i32) -> (i32, i32) {
    %c0_i32 = arith.constant 0 : i32
    %c0_i32_0 = arith.constant 0 : i32
    %c0_i32_1 = arith.constant 0 : i32
    return %c0_i32, %c0_i32_0 : i32, i32
  }
  func.func @transform_2(%arg0: i32) -> (i32, i32) {
    %c0_i32 = arith.constant 0 : i32
    %c0_i32_0 = arith.constant 0 : i32
    %c0_i32_1 = arith.constant 0 : i32
    return %c0_i32, %c0_i32_0 : i32, i32
  }
  func.func @transform_3(%arg0: i32) -> (i32, i32) {
    %c0_i32 = arith.constant 0 : i32
    %c0_i32_0 = arith.constant 0 : i32
    %c0_i32_1 = arith.constant 0 : i32
    return %c0_i32, %c0_i32_0 : i32, i32
  }
  func.func @transform_4(%arg0: i32) -> (i32, i32) {
    %c0_i32 = arith.constant 0 : i32
    %c0_i32_0 = arith.constant 0 : i32
    %c0_i32_1 = arith.constant 0 : i32
    return %c0_i32, %c0_i32_0 : i32, i32
  }
  func.func @transform_5(%arg0: i32) -> (i32, i32) {
    %c0_i32 = arith.constant 0 : i32
    %c0_i32_0 = arith.constant 0 : i32
    %c0_i32_1 = arith.constant 0 : i32
    return %c0_i32, %c0_i32_0 : i32, i32
  }
  func.func @transform_6(%arg0: i32) -> (i32, i32) {
    %c0_i32 = arith.constant 0 : i32
    %c0_i32_0 = arith.constant 0 : i32
    %c0_i32_1 = arith.constant 0 : i32
    return %c0_i32, %c0_i32_0 : i32, i32
  }
  func.func @transform_7(%arg0: i32) -> (i32, i32) {
    %c0_i32 = arith.constant 0 : i32
    %c0_i32_0 = arith.constant 0 : i32
    %c0_i32_1 = arith.constant 0 : i32
    return %c0_i32, %c0_i32_0 : i32, i32
  }
  func.func @transform_8(%arg0: i32) -> (i32, i32) {
    %c0_i32 = arith.constant 0 : i32
    %c0_i32_0 = arith.constant 0 : i32
    %c0_i32_1 = arith.constant 0 : i32
    return %c0_i32, %c0_i32_0 : i32, i32
  }
  func.func @transform_9(%arg0: i32) -> (i32, i32) {
    %c0_i32 = arith.constant 0 : i32
    %c0_i32_0 = arith.constant 0 : i32
    return %c0_i32, %arg0 : i32, i32
  }
}

</mosaic_0001>

<bundles_post_ra>
// kernel: tpu_custom_call.1
= control target key start
LH: loop header
LB: loop body
LE: loop exit
PB: predicated region body
PF: predicated region fallthrough
CT: control target
= control target key end

     0   :  { %vm67_vm0 = vcmask 1043456   ;;  %v621_v2 = vmov 0.0   ;;  %vm57_vm1 = vcmask 31744   ;;  %v622_v5 = vmov 0   ;;  %s788_s0 = inlined_call_operand.vmem [shape: f32[4,256], index: 0, kind: input, shape index: {}]   ;;  %s789_s1 = inlined_call_operand.vmem [shape: f32[20,4], index: 1, kind: input, shape index: {}]   ;;  %s790_s2 = inlined_call_operand.vmem [shape: f32[20,1], index: 2, kind: input, shape index: {}]   ;;  %s791_s3 = inlined_call_operand.vmem [shape: f32[40,20], index: 3, kind: input, shape index: {}]   ;;  %s792_s4 = inlined_call_operand.vmem [shape: f32[40,1], index: 4, kind: input, shape index: {}]   ;;  %s793_s5 = inlined_call_operand.vmem [shape: f32[20,40], index: 5, kind: input, shape index: {}]   ;;  %s794_s6 = inlined_call_operand.vmem [shape: f32[20,1], index: 6, kind: input, shape index: {}]   ;;  %s795_s7 = inlined_call_operand.vmem [shape: f32[2,20], index: 7, kind: input, shape index: {}]   ;;  %s796_s8 = inlined_call_operand.vmem [shape: f32[2,1], index: 8, kind: input, shape index: {}]   ;;  %s797_s9 = inlined_call_operand.hbm [shape: f32[2,256], index: 9, kind: output, shape index: {}]  }
   0x1   :  { %v33_v0 = vld [vmem:[%s788_s0] sm:$0xff]  ;;  %136 = vmatprep.mubr.f32.mxu0 %v621_v2  ;;  %282 = vmatprep.mubr.f32.mxu1 %v621_v2  ;;  %v39_v6 = vld [vmem:[%s790_s2 + $0x10] sm:$0xf]  ;;  %v38_v7 = vld [vmem:[%s790_s2 + $0x8] sm:$0xff] }
   0x2   :  { %v56_v1 = vcombine.high %v33_v0, %v33_v0  ;;  %v37_v3 = vld [vmem:[%s790_s2] sm:$0xff]  ;;  %594 = vset.pattern.permute.xlu0 %v622_v5  ;;  %595 = vset.pattern.permute.xlu1 %v622_v5 }
   0x3   :  { %v34_v4 = vld [vmem:[%s789_s1] sm:$0xff]  ;;  %42 = vperm.xlu0 %594, %v37_v3   ;;  %52 = vperm.xlu1 %595, %v39_v6  }
   0x4   :  { %556 = vmatprep.subr.msk.mxu0 %vm67_vm0, %v56_v1  ;;  %v166_v8 = vld [vmem:[%s792_s4] sm:$0xff] }
   0x5   :  { %557 = vmatpush1.msk.msra.mxu0 %vm67_vm0, %v33_v0 }
   0x6   :  { %558 = vmatmul.mubr.msk.f32.vlgmr.msra.gmra.mrb[0].mxu0 %vm57_vm1, %v34_v4 }
   0x7   :  { %14 = vsyncpa [#allocation3], 0  ;;  %142 = vmatprep.mubr.f32.mxu0 %v621_v2  ;;  %v35_v9 = vld [vmem:[%s789_s1 + $0x8] sm:$0xff]  ;;  %47 = vperm.xlu0 %594, %v38_v7   ;;  %v168_v11 = vld [vmem:[%s792_s4 + $0x10] sm:$0xff]  ;;  %vm196_vm2 = vcmask 162816   ;;  %vm344_vm3 = vcmask 326656  }
   0x8   :  { %v167_v10 = vld [vmem:[%s792_s4 + $0x8] sm:$0xff]  ;;  %173 = vperm.xlu1 %595, %v166_v8   ;;  %v36_v12 = vld [vmem:[%s789_s1 + $0x10] sm:$0xf]  ;;  %v169_v13 = vld [vmem:[%s792_s4 + $0x18] sm:$0xff]  ;;  %s623_s28 = smov [#allocation2]  }
   0x9   :  { %v170_v14 = vld [vmem:[%s792_s4 + $0x20] sm:$0xff]  ;;  %v327_v16 = vld [vmem:[%s794_s6 + $0x8] sm:$0xff]  ;;  %v328_v17 = vld [vmem:[%s794_s6 + $0x10] sm:$0xf]  ;;  %s548_s29 = sshll.u32 %s623_s28, 4  ;;  %s549_s29 = int_to_ptr.vmem [resolvable:$true] %s548_s29 }
   0xa   :  { %559 = vmatmul.mubr.msk.f32.gmra.mrb[2].mxu0 %vm57_vm1, %v35_v9  ;;  %v326_v15 = vld [vmem:[%s794_s6] sm:$0xff]  ;;  %v162_v43 = vld [vmem:[%s791_s3 + $0x8] sm:$0xff]  ;;  %v163_v44 = vld [vmem:[%s791_s3 + $0x10] sm:$0xff]  ;;  %s597_s30 = scalar_lea.vmem %s549_s29, 64  ;;  %p602_p1 = scmp.lt.s32.totalorder %s549_s29, %s549_s29 }
   0xb   :  { %148 = vmatprep.mubr.f32.mxu0 %v621_v2  ;;  %178 = vperm.xlu0 %594, %v167_v10   ;;  %v444_v18 = vld [vmem:[%s796_s8] sm:$0x3]  ;;  %v164_v45 = vld [vmem:[%s791_s3 + $0x18] sm:$0xff]  ;;  %p598_p0 = scmp.ne.s32.totalorder %s549_s29, %s597_s30  ;;  %p603_p2 = scmp.lt.s32.totalorder %s597_s30, %s597_s30 }
   0xc   :  { %183 = vperm.xlu1 %595, %v168_v11   ;;  %v161_v42 = vld [vmem:[%s791_s3] sm:$0xff] }
   0xd   :  { %v165_v46 = vld [vmem:[%s791_s3 + $0x20] sm:$0xff]  ;;  %p604_p3 = por %p603_p2, %p602_p1 }
   0xe   :  { %560 = vmatmul.mubr.msk.f32.gmra.mrb[4].mxu0 %vm57_vm1, %v36_v12 }
   0xf   :  { %418 = vmatprep.mubr.f32.mxu0 %v621_v2  ;;  %188 = vperm.xlu0 %594, %v169_v13   ;;  %p605_p4 = pnand %p604_p3, %p598_p0 }
  0x10   :  { %193 = vperm.xlu1 %595, %v170_v14  }
  0x13   :  { %331 = vperm.xlu0 %594, %v326_v15  }
  0x14   :  { %336 = vperm.xlu1 %595, %v327_v16  }
  0x17   :  { %341 = vperm.xlu0 %594, %v328_v17  }
  0x18   :  { %447 = vperm.xlu1 %595, %v444_v18  }
  0x82   :  { %v43_v19 = vpop.permute.xlu0 %42  ;;  %v53_v34 = vpop.permute.xlu1 %52 }
  0x86   :  { %v48_v23 = vpop.permute.xlu0 %47 }
  0x87   :  { %v174_v49 = vpop.permute.xlu1 %173 }
  0x8a   :  { %v179_v51 = vpop.permute.xlu0 %178 }
  0x8b   :  { %v184_v0 = vpop.permute.xlu1 %183 }
  0x8e   :  { %v189_v4 = vpop.permute.xlu0 %188 }
  0x8f   :  { %v194_v15 = vpop.permute.xlu1 %193 }
  0xd9   :  { %v138_v20 = vpop.f32.mrb[0].mxu0 }
  0xda   :  { %v140_v21 = vpop.f32.mrb[1].mxu0  ;;  %v139_v22 = vadd.f32 %v138_v20, %v43_v19 }
  0xdb   :  { %v141_v24 = vadd.f32 %v140_v21, %v43_v19 }
  0xdc   :  { %v155_v29 = vmax.f32 %v139_v22, 0.0 }
  0xdd   :  { %v144_v25 = vpop.f32.mrb[2].mxu0  ;;  %v156_v31 = vmax.f32 %v141_v24, 0.0  ;;  %v324_v24 = vld [vmem:[%s793_s5 + $0x8] sm:$0xff] }
  0xde   :  { %v145_v26 = vadd.f32 %v144_v25, %v48_v23  ;;  %v146_v27 = vpop.f32.mrb[3].mxu0  ;;  %v325_v25 = vld [vmem:[%s793_s5 + $0x10] sm:$0xf] }
  0xdf   :  { %v147_v28 = vadd.f32 %v146_v27, %v48_v23  ;;  %v323_v23 = vld [vmem:[%s793_s5] sm:$0xff] }
  0xe0   :  { %v157_v30 = vmax.f32 %v145_v26, 0.0 }
  0xe1   :  { %v158_v32 = vmax.f32 %v147_v28, 0.0  ;;  %v150_v33 = vpop.f32.mrb[4].mxu0  ;;  %v332_v28 = vpop.permute.xlu0 %331 }
  0xe2   :  { %v152_v35 = vpop.f32.mrb[5].mxu0  ;;  %v577_v36 = vpack.c.bf16 %v157_v30, %v155_v29  ;;  %v151_v39 = vadd.f32 %v150_v33, %v53_v34  ;;  %v337_v30 = vpop.permute.xlu1 %336 }
  0xe3   :  { %v153_v37 = vadd.f32 %v152_v35, %v53_v34  ;;  %v575_v38 = vpack.c.bf16 %v158_v32, %v156_v31 }
  0xe4   :  { %v159_v41 = vmax.f32 %v151_v39, 0.0 }
  0xe5   :  { %v160_v40 = vmax.f32 %v153_v37, 0.0  ;;  %576 = vmatprep.subr.bf16.mxu1 %v575_v38 }
  0xe6   :  { %578 = vmatpush1.bf16.msra.mxu1 %v577_v36 }
  0xe7   :  { %561 = vmatprep.subr.msk.mxu1 %vm67_vm0, %v160_v40 }
  0xea   :  { %562 = vmatpush1.msk.msra.mxu1 %vm67_vm0, %v159_v41  ;;  %v342_v41 = vpop.permute.xlu0 %341 }
  0xeb   :  { %563 = vmatmul.mubr.msk.f32.vlgmr.msra.gmra.mrb[0].mxu1 %vm196_vm2, %v161_v42 }
  0xec   :  { %288 = vmatprep.mubr.f32.mxu1 %v621_v2 }
  0xef   :  { %564 = vmatmul.mubr.msk.f32.gmra.mrb[2].mxu1 %vm196_vm2, %v162_v43 }
  0xf0   :  { %294 = vmatprep.mubr.f32.mxu1 %v621_v2 }
  0xf3   :  { %565 = vmatmul.mubr.msk.f32.gmra.mrb[4].mxu1 %vm196_vm2, %v163_v44 }
  0xf4   :  { %300 = vmatprep.mubr.f32.mxu1 %v621_v2 }
  0xf7   :  { %566 = vmatmul.mubr.msk.f32.gmra.mrb[6].mxu1 %vm196_vm2, %v164_v45 }
  0xf8   :  { %306 = vmatprep.mubr.f32.mxu1 %v621_v2 }
  0xfb   :  { %567 = vmatmul.mubr.msk.f32.gmra.mrb[8].mxu1 %vm196_vm2, %v165_v46 }
 0x1be   :  { %v284_v47 = vpop.f32.mrb[0].mxu1 }
 0x1bf   :  { %v286_v48 = vpop.f32.mrb[1].mxu1  ;;  %v285_v50 = vadd.f32 %v284_v47, %v174_v49 }
 0x1c0   :  { %v287_v52 = vadd.f32 %v286_v48, %v174_v49  ;;  %v443_v48 = vld [vmem:[%s795_s7] sm:$0x3]  ;;  %v448_v49 = vpop.permute.xlu1 %447 }
 0x1c1   :  { %v313_v57 = vmax.f32 %v285_v50, 0.0 }
 0x1c2   :  { %v290_v53 = vpop.f32.mrb[2].mxu1  ;;  %v314_v59 = vmax.f32 %v287_v52, 0.0 }
 0x1c3   :  { %v291_v54 = vadd.f32 %v290_v53, %v179_v51  ;;  %v292_v55 = vpop.f32.mrb[3].mxu1 }
 0x1c4   :  { %v293_v56 = vadd.f32 %v292_v55, %v179_v51 }
 0x1c5   :  { %v315_v58 = vmax.f32 %v291_v54, 0.0 }
 0x1c6   :  { %v316_v60 = vmax.f32 %v293_v56, 0.0  ;;  %v296_v61 = vpop.f32.mrb[4].mxu1 }
 0x1c7   :  { %v581_v62 = vpack.c.bf16 %v315_v58, %v313_v57  ;;  %v298_v63 = vpop.f32.mrb[5].mxu1  ;;  %v297_v3 = vadd.f32 %v296_v61, %v184_v0 }
 0x1c8   :  { %v579_v1 = vpack.c.bf16 %v316_v60, %v314_v59  ;;  %v299_v5 = vadd.f32 %v298_v63, %v184_v0 }
 0x1c9   :  { %v317_v10 = vmax.f32 %v297_v3, 0.0 }
 0x1ca   :  { %v302_v6 = vpop.f32.mrb[6].mxu1  ;;  %580 = vmatprep.subr.bf16.mxu0 %v579_v1  ;;  %v318_v12 = vmax.f32 %v299_v5, 0.0 }
 0x1cb   :  { %v303_v7 = vadd.f32 %v302_v6, %v189_v4  ;;  %v304_v8 = vpop.f32.mrb[7].mxu1  ;;  %582 = vmatpush1.bf16.msra.mxu0 %v581_v62 }
 0x1cc   :  { %v305_v9 = vadd.f32 %v304_v8, %v189_v4 }
 0x1cd   :  { %v319_v11 = vmax.f32 %v303_v7, 0.0 }
 0x1ce   :  { %v320_v13 = vmax.f32 %v305_v9, 0.0  ;;  %v308_v14 = vpop.f32.mrb[8].mxu1 }
 0x1cf   :  { %v585_v16 = vpack.c.bf16 %v319_v11, %v317_v10  ;;  %v310_v17 = vpop.f32.mrb[9].mxu1  ;;  %v309_v20 = vadd.f32 %v308_v14, %v194_v15 }
 0x1d0   :  { %v583_v18 = vpack.c.bf16 %v320_v13, %v318_v12  ;;  %v311_v19 = vadd.f32 %v310_v17, %v194_v15 }
 0x1d1   :  { %v321_v22 = vmax.f32 %v309_v20, 0.0 }
 0x1d2   :  { %v322_v21 = vmax.f32 %v311_v19, 0.0  ;;  %584 = vmatprep.subr.bf16.mxu0 %v583_v18 }
 0x1d3   :  { %586 = vmatpush1.bf16.msra.mxu0 %v585_v16 }
 0x1d4   :  { %362 = vmatprep.subr.mxu0 %v322_v21 }
 0x1d7   :  { %363 = vmatpush1.msra.mxu0 %v321_v22 }
 0x1d8   :  { %568 = vmatmul.mubr.msk.f32.vlgmr.msra.gmra.mrb[6].mxu0 %vm344_vm3, %v323_v23 }
 0x1d9   :  { %424 = vmatprep.mubr.f32.mxu0 %v621_v2 }
 0x1dc   :  { %569 = vmatmul.mubr.msk.f32.gmra.mrb[8].mxu0 %vm344_vm3, %v324_v24 }
 0x1dd   :  { %430 = vmatprep.mubr.f32.mxu0 %v621_v2 }
 0x1e0   :  { %570 = vmatmul.mubr.msk.f32.gmra.mrb[10].mxu0 %vm344_vm3, %v325_v25 }
 0x1e1   :  { %523 = vmatprep.mubr.f32.mxu0 %v621_v2 }
 0x2ab   :  { %v420_v26 = vpop.f32.mrb[6].mxu0 }
 0x2ac   :  { %v422_v27 = vpop.f32.mrb[7].mxu0  ;;  %v421_v29 = vadd.f32 %v420_v26, %v332_v28 }
 0x2ad   :  { %v423_v31 = vadd.f32 %v422_v27, %v332_v28 }
 0x2ae   :  { %v437_v36 = vmax.f32 %v421_v29, 0.0 }
 0x2af   :  { %v426_v32 = vpop.f32.mrb[8].mxu0  ;;  %v438_v38 = vmax.f32 %v423_v31, 0.0 }
 0x2b0   :  { %v427_v33 = vadd.f32 %v426_v32, %v337_v30  ;;  %v428_v34 = vpop.f32.mrb[9].mxu0 }
 0x2b1   :  { %v429_v35 = vadd.f32 %v428_v34, %v337_v30 }
 0x2b2   :  { %v439_v37 = vmax.f32 %v427_v33, 0.0 }
 0x2b3   :  { %v440_v39 = vmax.f32 %v429_v35, 0.0  ;;  %v432_v40 = vpop.f32.mrb[10].mxu0 }
 0x2b4   :  { %v589_v42 = vpack.c.bf16 %v439_v37, %v437_v36  ;;  %v434_v43 = vpop.f32.mrb[11].mxu0  ;;  %v433_v45 = vadd.f32 %v432_v40, %v342_v41 }
 0x2b5   :  { %v587_v44 = vpack.c.bf16 %v440_v39, %v438_v38  ;;  %v435_v2 = vadd.f32 %v434_v43, %v342_v41 }
 0x2b6   :  { %v441_v47 = vmax.f32 %v433_v45, 0.0 }
 0x2b7   :  { %v442_v46 = vmax.f32 %v435_v2, 0.0  ;;  %588 = vmatprep.subr.bf16.mxu0 %v587_v44 }
 0x2b8   :  { %590 = vmatpush1.bf16.msra.mxu0 %v589_v42 }
 0x2b9   :  { %571 = vmatprep.subr.msk.mxu0 %vm67_vm0, %v442_v46 }
 0x2bc   :  { %572 = vmatpush1.msk.msra.mxu0 %vm67_vm0, %v441_v47 }
 0x2bd   :  { %573 = vmatmul.mubr.msk.f32.vlgmr.msra.gmra.mrb[12].mxu0 %vm196_vm2, %v443_v48 }
 0x390   :  { %v525_v50 = vpop.f32.mrb[12].mxu0 }
 0x391   :  { %v526_v51 = vadd.f32 %v525_v50, %v448_v49  ;;  %v527_v52 = vpop.f32.mrb[13].mxu0 }
 0x392   :  { %v528_v53 = vadd.f32 %v527_v52, %v448_v49 }
 0x394   :  { %v532_v54 = vcombine.low %v526_v51, %v528_v53 }
 0x396   :  { %574 = vst.sshfl [vmem:[#allocation2] sm:$0x33 pattern:$0x76325410] %v532_v54 }
 0x397   :  { %608 = shalt.err (!%p605_p4)
}
 0x398   :  { %s609_s11 = scalar_lea.hbm %s797_s9, 64 }
 0x399   :  { %p610_p5 = scmp.ne.s32.totalorder %s797_s9, %s609_s11  ;;  %p613_p6 = scmp.lt.u32.totalorder %s609_s11, %s797_s9 }
 0x39b   :  { %p615_p7 = pnand %p613_p6, %p610_p5 }
 0x39d   :  { %618 = shalt.err (!%p615_p7)
}
 0x39e   :  { %551 = dma.vmem_to_hbm [thread:$0]  %s549_s29, 64, %s797_s9, [#allocation3]  }
 0x39f   :  { %619 = dma.done.wait [#allocation3], 64  }
 0x3a0   :  { %620 = vsyncadd [#allocation3], 4294967232 }
 0x3a1   :  { %555 = vsyncpa [#allocation3], 1 }

</bundles_post_ra>
